<compile_context>
chip_gen: v7x
topology: tpu7x:2x2x1
jax: 0.10.0
libtpu: 0.0.40
codegen_flags: <defaults>
</compile_context>

<pallas_src>
import jax
import jax.numpy as jnp
from jax.experimental import pallas as pl
from jax.experimental.pallas import tpu as pltpu


# ---------------------------------------------------------------------------
# Fast path: K == num_states (beam covers every state)
# ---------------------------------------------------------------------------
def _full_beam_kernel(u_ref, tgt_ref, mask_ref, e1_ref, e2_ref,
                      e1g_ref, e2g_ref, out_ref):
    """PIECEWISE NLL when the beam is a permutation of all states."""
    B, T, V = u_ref.shape

    u = u_ref[...]            # (B, T, V)   unaries
    tgt = tgt_ref[...]        # (B, T)      gold states, int32
    mask = mask_ref[...]      # (B, T)      float32 {0, 1}
    e1 = e1_ref[...]          # (V, D)      E1 table
    e2 = e2_ref[...]          # (V, D)      E2 table
    e1g = e1g_ref[...]        # (B, T-1, D) E1[targets[:, :-1]]
    e2g = e2g_ref[...]        # (B, T-1, D) E2[targets[:, 1:]]

    # ---- node term: gold log-softmax over all states (lane-dense) ---------
    iota_v = jax.lax.broadcasted_iota(jnp.int32, (B, T, V), 2)
    gold_oh = (iota_v == tgt[:, :, None]).astype(jnp.float32)       # (B, T, V)
    node_gold = jnp.sum(u * gold_oh, axis=-1)                       # (B, T)
    n_max = jnp.max(u, axis=-1)                                     # (B, T)
    n_lse = jnp.log(jnp.sum(jnp.exp(u - n_max[:, :, None]), axis=-1)) + n_max
    node_ct = mask * (node_gold - n_lse)                            # (B, T)

    # ---- edge term: the pairwise log-partition is a single constant -------
    pair = jax.lax.dot_general(e1, e2, (((1,), (1,)), ((), ())),
                               preferred_element_type=jnp.float32)  # (V, V)
    p_max = jnp.max(pair)
    p_sum = jnp.sum(jnp.exp(pair - p_max))
    edge_lse = jnp.log(jnp.full((1, 1), p_sum, dtype=jnp.float32)) + p_max  # (1,1)

    gold_edge = jnp.sum(e1g * e2g, axis=-1)                         # (B, T-1)
    edge_ct = mask[:, 1:] * (gold_edge - edge_lse)                  # (B, T-1)

    # ---- per-batch normalized log-likelihood (B is small and static) ------
    for b in range(B):
        ll_b = jnp.sum(node_ct[b:b + 1, :]) + jnp.sum(edge_ct[b:b + 1, :])
        out_ref[b:b + 1, :] = jnp.full(
            (1, 1), ll_b / jnp.sum(mask[b:b + 1, :]), dtype=jnp.float32)


def _nll_full_beam(unaries, masks, targets, e1_w, e2_w):
    B, T, V = unaries.shape
    D = e1_w.shape[1]
    mask_f = masks.astype(jnp.float32)
    tgt = targets.astype(jnp.int32)
    # Tiny O(B*T*D) gold-row lookups (the big (B,T,K,D) beam gathers are gone).
    e1_gold = e1_w[targets[:, :-1]]                                  # (B, T-1, D)
    e2_gold = e2_w[targets[:, 1:]]                                   # (B, T-1, D)

    per_batch = pl.pallas_call(
        _full_beam_kernel,
        out_shape=jax.ShapeDtypeStruct((B, 1), jnp.float32),
        grid=(1,),
        in_specs=[
            pl.BlockSpec((B, T, V), lambda i: (0, 0, 0)),
            pl.BlockSpec((B, T), lambda i: (0, 0)),
            pl.BlockSpec((B, T), lambda i: (0, 0)),
            pl.BlockSpec((V, D), lambda i: (0, 0)),
            pl.BlockSpec((V, D), lambda i: (0, 0)),
            pl.BlockSpec((B, T - 1, D), lambda i: (0, 0, 0)),
            pl.BlockSpec((B, T - 1, D), lambda i: (0, 0, 0)),
        ],
        out_specs=pl.BlockSpec((B, 1), lambda i: (0, 0)),
        compiler_params=pltpu.CompilerParams(
            dimension_semantics=("arbitrary",)),
    )(unaries, tgt, mask_f, e1_w, e2_w, e1_gold, e2_gold)
    return -jnp.mean(per_batch[:, 0])


# ---------------------------------------------------------------------------
# General path: K < num_states (true beam)
# ---------------------------------------------------------------------------
def _beam_piecewise_kernel(node_ref, s1_ref, s2_ref, mask_ref, sel_ref, out_ref):
    """PIECEWISE NLL on a K < num_states beam; batch folded into one call."""
    B, T, _ = node_ref.shape
    node = node_ref[...]      # (B, T, K)  beam node potentials, gold at k = 0
    s1 = s1_ref[...]          # (N, K, D)  E1[beam_targets[:, :-1]], N = B*(T-1)
    s2 = s2_ref[...]          # (N, K, D)  E2[beam_targets[:, 1:]]
    mask = mask_ref[...]      # (B, T)
    sel = sel_ref[...]        # (B, N)     block-diagonal edge-mask selector

    # ---- node term ---------------------------------------------------------
    n_max = jnp.max(node, axis=-1, keepdims=True)                   # (B, T, 1)
    n_lse = jnp.log(jnp.sum(jnp.exp(node - n_max), axis=-1,
                            keepdims=True)) + n_max                 # (B, T, 1)
    node_ct = jnp.sum(mask[:, :, None] * (node[:, :, 0:1] - n_lse),
                      axis=-1)                                       # (B, T)

    # ---- edge term (edge_wise == identity -> no E1 @ W matmul) ------------
    edge = jnp.einsum('nkd,nld->nkl', s1, s2,
                      preferred_element_type=jnp.float32)           # (N, K, K)
    e_max = jnp.max(jnp.max(edge, axis=-1), axis=-1, keepdims=True)  # (N, 1)
    e_sum = jnp.sum(jnp.sum(jnp.exp(edge - e_max[:, :, None]), axis=-1),
                    axis=-1, keepdims=True)                          # (N, 1)
    e_lse = jnp.log(e_sum) + e_max                                   # (N, 1)
    edge_gold = edge[:, 0, 0:1] - e_lse                              # (N, 1)
    # masked per-batch sum via the block-diagonal selector: (B, N) @ (N, 1)
    edge_term = jnp.dot(sel, edge_gold,
                        preferred_element_type=jnp.float32)          # (B, 1)

    for b in range(B):
        ll_b = jnp.full((1, 1), jnp.sum(node_ct[b:b + 1, :]),
                        dtype=jnp.float32) + edge_term[b:b + 1, :]
        out_ref[b:b + 1, :] = ll_b / jnp.sum(mask[b:b + 1, :])


def _nll_beam(unaries, masks, targets, e1_w, e2_w, beam_k):
    B, T, V = unaries.shape
    D = e1_w.shape[1]
    Tm1 = T - 1
    N = B * Tm1
    mask_f = masks.astype(jnp.float32)

    # TODO(synk): top-k beam selection has no clean in-kernel TPU equivalent;
    # kept as JAX glue (gold state forced to beam index 0 via the +inf scatter).
    gold_oh = jax.nn.one_hot(targets, V, dtype=jnp.bool_)
    beam_targets = jax.lax.top_k(jnp.where(gold_oh, jnp.inf, unaries), beam_k)[1]
    beam_node_phi = jnp.take_along_axis(unaries, beam_targets, axis=2)  # (B,T,K)
    # TODO(synk): beam embedding gathers kept as glue; they could become one-hot
    # MXU matmuls in-kernel if T*K*D grows enough for the gather DMA to matter.
    s1 = e1_w[beam_targets[:, :-1]].reshape(N, beam_k, D)
    s2 = e2_w[beam_targets[:, 1:]].reshape(N, beam_k, D)
    # block-diagonal selector carrying the edge mask: sel[b, b*Tm1 + t] = mask[b, t+1]
    sel = (jnp.eye(B, dtype=jnp.float32)[:, :, None]
           * mask_f[None, :, 1:]).reshape(B, N)

    per_batch = pl.pallas_call(
        _beam_piecewise_kernel,
        out_shape=jax.ShapeDtypeStruct((B, 1), jnp.float32),
        grid=(1,),
        in_specs=[
            pl.BlockSpec((B, T, beam_k), lambda i: (0, 0, 0)),
            pl.BlockSpec((N, beam_k, D), lambda i: (0, 0, 0)),
            pl.BlockSpec((N, beam_k, D), lambda i: (0, 0, 0)),
            pl.BlockSpec((B, T), lambda i: (0, 0)),
            pl.BlockSpec((B, N), lambda i: (0, 0)),
        ],
        out_specs=pl.BlockSpec((B, 1), lambda i: (0, 0)),
        compiler_params=pltpu.CompilerParams(
            dimension_semantics=("arbitrary",)),
    )(beam_node_phi, s1, s2, mask_f, sel)
    return -jnp.mean(per_batch[:, 0])


# ---------------------------------------------------------------------------
# Public entry point (matches LinearChainCRF.forward, learning=PIECEWISE,
# node_features=None, targets given)
# ---------------------------------------------------------------------------
def crf_piecewise_nll(unaries, masks, targets, e1_w, e2_w, beam_size):
    V = unaries.shape[2]
    K = min(beam_size, V)
    if K >= V:   # beam covers every state -> fused fast path
        return _nll_full_beam(unaries, masks, targets, e1_w, e2_w)
    return _nll_beam(unaries, masks, targets, e1_w, e2_w, K)


def crf_piecewise_nll_reference(unaries, masks, targets, e1_w, e2_w, beam_size):
    """Pure-JAX reference mirroring the PyTorch PIECEWISE branch."""
    B, T, V = unaries.shape
    K = min(beam_size, V)
    D = e1_w.shape[1]
    onehot = jax.nn.one_hot(targets, V, dtype=jnp.bool_)
    _unaries = jnp.where(onehot, jnp.inf, unaries)
    beam_targets = jax.lax.top_k(_unaries, K)[1]
    beam_node_phi = jnp.take_along_axis(unaries, beam_targets, axis=2)
    s1 = e1_w[beam_targets[:, :-1]]
    s2 = e2_w[beam_targets[:, 1:]]
    edge_wise = jnp.eye(D, dtype=jnp.float32)
    s1w = jnp.einsum('btkd,de->btke', s1, edge_wise)
    edge = jnp.einsum('btke,btle->btkl', s1w, s2)
    norm_node = jax.nn.log_softmax(beam_node_phi, axis=-1)
    node_gold = jnp.where(masks, norm_node[:, :, 0], 0.0)
    norm_edge = jax.nn.log_softmax(edge.reshape(B, T - 1, K * K),
                                   axis=-1).reshape(B, T - 1, K, K)
    edge_gold = jnp.where(masks[:, 1:], norm_edge[:, :, 0, 0], 0.0)
    ll = node_gold.sum(-1) + edge_gold.sum(-1)
    return -jnp.mean(ll / masks.sum(-1))


if __name__ == "__main__":
    # shapes consistent with the module: num_states=32, low_rank=32, batch=2, seq=8
    B, T, V, D = 2, 8, 32, 32

    key = jax.random.PRNGKey(0)
    k1, k2, k3, k4 = jax.random.split(key, 4)
    unaries = jax.random.normal(k1, (B, T, V), dtype=jnp.float32)
    targets = jax.random.randint(k2, (B, T), 0, V, dtype=jnp.int32)
    lengths = jnp.array([T, T - 2], dtype=jnp.int32)
    masks = jnp.arange(T)[None, :] < lengths[:, None]          # (B, T) bool

    # nn.Embedding(num_states, low_rank) weights, deterministic here
    e1_w = jax.random.normal(k3, (V, D), dtype=jnp.float32)
    e2_w = jax.random.normal(k4, (V, D), dtype=jnp.float32)

    nll_fn = jax.jit(crf_piecewise_nll, static_argnums=(5,))

    # shipped config: beam_size=64 clamped to num_states=32 (K == V fast path)
    nll_full = nll_fn(unaries, masks, targets, e1_w, e2_w, 64)
    jax.block_until_ready(nll_full)
    ref_full = crf_piecewise_nll_reference(unaries, masks, targets, e1_w, e2_w, 64)
    assert jnp.allclose(nll_full, ref_full, rtol=5e-3, atol=5e-3), (nll_full, ref_full)

    # reduced-beam config (K < V) exercising the beam kernel
    nll_beam = nll_fn(unaries, masks, targets, e1_w, e2_w, 8)
    jax.block_until_ready(nll_beam)
    ref_beam = crf_piecewise_nll_reference(unaries, masks, targets, e1_w, e2_w, 8)
    assert jnp.allclose(nll_beam, ref_beam, rtol=5e-3, atol=5e-3), (nll_beam, ref_beam)

    print("KERNEL_OK")
</pallas_src>

<mosaic_0001>
module attributes {stable_mosaic.version = 11 : i64} {
  func.func @_full_beam_kernel(%arg0: i32, %arg1: memref<2x8x32xf32, #tpu.memory_space<vmem>>, %arg2: memref<2x8xi32, #tpu.memory_space<vmem>>, %arg3: memref<2x8xf32, #tpu.memory_space<vmem>>, %arg4: memref<32x32xf32, #tpu.memory_space<vmem>>, %arg5: memref<32x32xf32, #tpu.memory_space<vmem>>, %arg6: memref<2x7x32xf32, #tpu.memory_space<vmem>>, %arg7: memref<2x7x32xf32, #tpu.memory_space<vmem>>, %arg8: memref<2x1xf32, #tpu.memory_space<vmem>>) attributes {dimension_semantics = [#tpu.dimension_semantics<arbitrary>], iteration_bounds = array<i64: 1>, scalar_prefetch = 0 : i64, scratch_operands = 0 : i64, tpu.core_type = #tpu.core_type<tc>, window_params = [{pipeline_mode = #tpu.pipeline_mode<synchronous>, transform_indices = @transform_0, window_bounds = array<i64: 2, 8, 32>}, {pipeline_mode = #tpu.pipeline_mode<synchronous>, transform_indices = @transform_1, window_bounds = array<i64: 2, 8>}, {pipeline_mode = #tpu.pipeline_mode<synchronous>, transform_indices = @transform_2, window_bounds = array<i64: 2, 8>}, {pipeline_mode = #tpu.pipeline_mode<synchronous>, transform_indices = @transform_3, window_bounds = array<i64: 32, 32>}, {pipeline_mode = #tpu.pipeline_mode<synchronous>, transform_indices = @transform_4, window_bounds = array<i64: 32, 32>}, {pipeline_mode = #tpu.pipeline_mode<synchronous>, transform_indices = @transform_5, window_bounds = array<i64: 2, 7, 32>}, {pipeline_mode = #tpu.pipeline_mode<synchronous>, transform_indices = @transform_6, window_bounds = array<i64: 2, 7, 32>}, {pipeline_mode = #tpu.pipeline_mode<synchronous>, transform_indices = @transform_7, window_bounds = array<i64: 2, 1>}]} {
    %c0 = arith.constant 0 : index
    %c0_0 = arith.constant 0 : index
    %c0_1 = arith.constant 0 : index
    %0 = vector.load %arg1[%c0, %c0_0, %c0_1] : memref<2x8x32xf32, #tpu.memory_space<vmem>>, vector<2x8x32xf32>
    %c0_2 = arith.constant 0 : index
    %c0_3 = arith.constant 0 : index
    %1 = vector.load %arg2[%c0_2, %c0_3] : memref<2x8xi32, #tpu.memory_space<vmem>>, vector<2x8xi32>
    %c0_4 = arith.constant 0 : index
    %c0_5 = arith.constant 0 : index
    %2 = vector.load %arg3[%c0_4, %c0_5] : memref<2x8xf32, #tpu.memory_space<vmem>>, vector<2x8xf32>
    %c0_6 = arith.constant 0 : index
    %c0_7 = arith.constant 0 : index
    %3 = vector.load %arg4[%c0_6, %c0_7] : memref<32x32xf32, #tpu.memory_space<vmem>>, vector<32x32xf32>
    %c0_8 = arith.constant 0 : index
    %c0_9 = arith.constant 0 : index
    %4 = vector.load %arg5[%c0_8, %c0_9] : memref<32x32xf32, #tpu.memory_space<vmem>>, vector<32x32xf32>
    %c0_10 = arith.constant 0 : index
    %c0_11 = arith.constant 0 : index
    %c0_12 = arith.constant 0 : index
    %5 = vector.load %arg6[%c0_10, %c0_11, %c0_12] : memref<2x7x32xf32, #tpu.memory_space<vmem>>, vector<2x7x32xf32>
    %c0_13 = arith.constant 0 : index
    %c0_14 = arith.constant 0 : index
    %c0_15 = arith.constant 0 : index
    %6 = vector.load %arg7[%c0_13, %c0_14, %c0_15] : memref<2x7x32xf32, #tpu.memory_space<vmem>>, vector<2x7x32xf32>
    %7 = tpu.iota {dimensions = array<i32: 2>} : vector<2x8x32xi32>
    %8 = vector.shape_cast %1 : vector<2x8xi32> to vector<2x8x1xi32>
    %9 = vector.broadcast %8 : vector<2x8x1xi32> to vector<2x8x32xi32>
    %10 = arith.cmpi eq, %7, %9 : vector<2x8x32xi32>
    %11 = arith.extui %10 : vector<2x8x32xi1> to vector<2x8x32xi32>
    %12 = arith.sitofp %11 : vector<2x8x32xi32> to vector<2x8x32xf32>
    %13 = arith.mulf %0, %12 : vector<2x8x32xf32>
    %cst = arith.constant dense<0.000000e+00> : vector<2x8xf32>
    %14 = vector.multi_reduction <add>, %13, %cst [2] : vector<2x8x32xf32> to vector<2x8xf32>
    %cst_16 = arith.constant dense<0xFF800000> : vector<2x8xf32>
    %15 = vector.multi_reduction <maximumf>, %0, %cst_16 [2] : vector<2x8x32xf32> to vector<2x8xf32>
    %16 = vector.shape_cast %15 : vector<2x8xf32> to vector<2x8x1xf32>
    %17 = vector.broadcast %16 : vector<2x8x1xf32> to vector<2x8x32xf32>
    %18 = arith.subf %0, %17 : vector<2x8x32xf32>
    %19 = math.exp %18 : vector<2x8x32xf32>
    %cst_17 = arith.constant dense<0.000000e+00> : vector<2x8xf32>
    %20 = vector.multi_reduction <add>, %19, %cst_17 [2] : vector<2x8x32xf32> to vector<2x8xf32>
    %21 = math.log %20 : vector<2x8xf32>
    %22 = arith.addf %21, %15 : vector<2x8xf32>
    %23 = arith.subf %14, %22 : vector<2x8xf32>
    %24 = arith.mulf %2, %23 : vector<2x8xf32>
    %cst_18 = arith.constant dense<0.000000e+00> : vector<32x32xf32>
    %25 = tpu.matmul %3, %4, %cst_18 {dimension_numbers = #tpu.dot_dimension_numbers<[1], [1], [0], [0], [0, 0, 1, 0], [], []>} : vector<32x32xf32>, vector<32x32xf32>, vector<32x32xf32> -> vector<32x32xf32>
    %26 = vector.shape_cast %25 : vector<32x32xf32> to vector<1x32x32xf32>
    %cst_19 = arith.constant dense<0xFF800000> : vector<1xf32>
    %27 = vector.multi_reduction <maximumf>, %26, %cst_19 [1, 2] : vector<1x32x32xf32> to vector<1xf32>
    %28 = vector.shape_cast %27 : vector<1xf32> to vector<1x1x1xf32>
    %29 = vector.extract %28[0, 0, 0] : f32 from vector<1x1x1xf32>
    %30 = vector.broadcast %29 : f32 to vector<32x32xf32>
    %31 = arith.subf %25, %30 : vector<32x32xf32>
    %32 = math.exp %31 : vector<32x32xf32>
    %33 = vector.shape_cast %32 : vector<32x32xf32> to vector<1x32x32xf32>
    %cst_20 = arith.constant dense<0.000000e+00> : vector<1xf32>
    %34 = vector.multi_reduction <add>, %33, %cst_20 [1, 2] : vector<1x32x32xf32> to vector<1xf32>
    %35 = vector.shape_cast %34 : vector<1xf32> to vector<1x1x1xf32>
    %36 = vector.extract %35[0, 0, 0] : f32 from vector<1x1x1xf32>
    %37 = vector.broadcast %36 : f32 to vector<1x1xf32>
    %38 = math.log %37 : vector<1x1xf32>
    %39 = vector.broadcast %29 : f32 to vector<1x1xf32>
    %40 = arith.addf %38, %39 : vector<1x1xf32>
    %41 = arith.mulf %5, %6 : vector<2x7x32xf32>
    %cst_21 = arith.constant dense<0.000000e+00> : vector<2x7xf32>
    %42 = vector.multi_reduction <add>, %41, %cst_21 [2] : vector<2x7x32xf32> to vector<2x7xf32>
    %43 = vector.extract_strided_slice %2 {offsets = [0, 1], sizes = [2, 7], strides = [1, 1]} : vector<2x8xf32> to vector<2x7xf32>
    %44 = vector.broadcast %40 : vector<1x1xf32> to vector<2x7xf32>
    %45 = arith.subf %42, %44 : vector<2x7xf32>
    %46 = arith.mulf %43, %45 : vector<2x7xf32>
    %47 = vector.extract_strided_slice %24 {offsets = [0, 0], sizes = [1, 8], strides = [1, 1]} : vector<2x8xf32> to vector<1x8xf32>
    %48 = vector.shape_cast %47 : vector<1x8xf32> to vector<1x1x8xf32>
    %cst_22 = arith.constant dense<0.000000e+00> : vector<1xf32>
    %49 = vector.multi_reduction <add>, %48, %cst_22 [1, 2] : vector<1x1x8xf32> to vector<1xf32>
    %50 = vector.shape_cast %49 : vector<1xf32> to vector<1x1x1xf32>
    %51 = vector.extract %50[0, 0, 0] : f32 from vector<1x1x1xf32>
    %52 = vector.extract_strided_slice %46 {offsets = [0, 0], sizes = [1, 7], strides = [1, 1]} : vector<2x7xf32> to vector<1x7xf32>
    %53 = vector.shape_cast %52 : vector<1x7xf32> to vector<1x1x7xf32>
    %cst_23 = arith.constant dense<0.000000e+00> : vector<1xf32>
    %54 = vector.multi_reduction <add>, %53, %cst_23 [1, 2] : vector<1x1x7xf32> to vector<1xf32>
    %55 = vector.shape_cast %54 : vector<1xf32> to vector<1x1x1xf32>
    %56 = vector.extract %55[0, 0, 0] : f32 from vector<1x1x1xf32>
    %57 = arith.addf %51, %56 : f32
    %58 = vector.extract_strided_slice %2 {offsets = [0, 0], sizes = [1, 8], strides = [1, 1]} : vector<2x8xf32> to vector<1x8xf32>
    %59 = vector.shape_cast %58 : vector<1x8xf32> to vector<1x1x8xf32>
    %cst_24 = arith.constant dense<0.000000e+00> : vector<1xf32>
    %60 = vector.multi_reduction <add>, %59, %cst_24 [1, 2] : vector<1x1x8xf32> to vector<1xf32>
    %61 = vector.shape_cast %60 : vector<1xf32> to vector<1x1x1xf32>
    %62 = vector.extract %61[0, 0, 0] : f32 from vector<1x1x1xf32>
    %63 = arith.divf %57, %62 : f32
    %64 = vector.broadcast %63 : f32 to vector<1x1xf32>
    %c0_25 = arith.constant 0 : index
    %c0_26 = arith.constant 0 : index
    %65 = vector.load %arg8[%c0_25, %c0_26] : memref<2x1xf32, #tpu.memory_space<vmem>>, vector<1x1xf32>
    tpu.vector_store %arg8[%c0_25, %c0_26], %64 {strides = array<i32>} : memref<2x1xf32, #tpu.memory_space<vmem>>, vector<1x1xf32>,
    %66 = vector.extract_strided_slice %24 {offsets = [1, 0], sizes = [1, 8], strides = [1, 1]} : vector<2x8xf32> to vector<1x8xf32>
    %67 = vector.shape_cast %66 : vector<1x8xf32> to vector<1x1x8xf32>
    %cst_27 = arith.constant dense<0.000000e+00> : vector<1xf32>
    %68 = vector.multi_reduction <add>, %67, %cst_27 [1, 2] : vector<1x1x8xf32> to vector<1xf32>
    %69 = vector.shape_cast %68 : vector<1xf32> to vector<1x1x1xf32>
    %70 = vector.extract %69[0, 0, 0] : f32 from vector<1x1x1xf32>
    %71 = vector.extract_strided_slice %46 {offsets = [1, 0], sizes = [1, 7], strides = [1, 1]} : vector<2x7xf32> to vector<1x7xf32>
    %72 = vector.shape_cast %71 : vector<1x7xf32> to vector<1x1x7xf32>
    %cst_28 = arith.constant dense<0.000000e+00> : vector<1xf32>
    %73 = vector.multi_reduction <add>, %72, %cst_28 [1, 2] : vector<1x1x7xf32> to vector<1xf32>
    %74 = vector.shape_cast %73 : vector<1xf32> to vector<1x1x1xf32>
    %75 = vector.extract %74[0, 0, 0] : f32 from vector<1x1x1xf32>
    %76 = arith.addf %70, %75 : f32
    %77 = vector.extract_strided_slice %2 {offsets = [1, 0], sizes = [1, 8], strides = [1, 1]} : vector<2x8xf32> to vector<1x8xf32>
    %78 = vector.shape_cast %77 : vector<1x8xf32> to vector<1x1x8xf32>
    %cst_29 = arith.constant dense<0.000000e+00> : vector<1xf32>
    %79 = vector.multi_reduction <add>, %78, %cst_29 [1, 2] : vector<1x1x8xf32> to vector<1xf32>
    %80 = vector.shape_cast %79 : vector<1xf32> to vector<1x1x1xf32>
    %81 = vector.extract %80[0, 0, 0] : f32 from vector<1x1x1xf32>
    %82 = arith.divf %76, %81 : f32
    %83 = vector.broadcast %82 : f32 to vector<1x1xf32>
    %c1 = arith.constant 1 : index
    %c0_30 = arith.constant 0 : index
    %84 = vector.load %arg8[%c1, %c0_30] : memref<2x1xf32, #tpu.memory_space<vmem>>, vector<1x1xf32>
    tpu.vector_store %arg8[%c1, %c0_30], %83 {strides = array<i32>} : memref<2x1xf32, #tpu.memory_space<vmem>>, vector<1x1xf32>,
    return
  }
  func.func @transform_0(%arg0: i32) -> (i32, i32, i32) {
    %c0_i32 = arith.constant 0 : i32
    %c0_i32_0 = arith.constant 0 : i32
    %c0_i32_1 = arith.constant 0 : i32
    %c0_i32_2 = arith.constant 0 : i32
    return %c0_i32, %c0_i32_0, %c0_i32_1 : i32, i32, i32
  }
  func.func @transform_1(%arg0: i32) -> (i32, i32) {
    %c0_i32 = arith.constant 0 : i32
    %c0_i32_0 = arith.constant 0 : i32
    %c0_i32_1 = arith.constant 0 : i32
    return %c0_i32, %c0_i32_0 : i32, i32
  }
  func.func @transform_2(%arg0: i32) -> (i32, i32) {
    %c0_i32 = arith.constant 0 : i32
    %c0_i32_0 = arith.constant 0 : i32
    %c0_i32_1 = arith.constant 0 : i32
    return %c0_i32, %c0_i32_0 : i32, i32
  }
  func.func @transform_3(%arg0: i32) -> (i32, i32) {
    %c0_i32 = arith.constant 0 : i32
    %c0_i32_0 = arith.constant 0 : i32
    %c0_i32_1 = arith.constant 0 : i32
    return %c0_i32, %c0_i32_0 : i32, i32
  }
  func.func @transform_4(%arg0: i32) -> (i32, i32) {
    %c0_i32 = arith.constant 0 : i32
    %c0_i32_0 = arith.constant 0 : i32
    %c0_i32_1 = arith.constant 0 : i32
    return %c0_i32, %c0_i32_0 : i32, i32
  }
  func.func @transform_5(%arg0: i32) -> (i32, i32, i32) {
    %c0_i32 = arith.constant 0 : i32
    %c0_i32_0 = arith.constant 0 : i32
    %c0_i32_1 = arith.constant 0 : i32
    %c0_i32_2 = arith.constant 0 : i32
    return %c0_i32, %c0_i32_0, %c0_i32_1 : i32, i32, i32
  }
  func.func @transform_6(%arg0: i32) -> (i32, i32, i32) {
    %c0_i32 = arith.constant 0 : i32
    %c0_i32_0 = arith.constant 0 : i32
    %c0_i32_1 = arith.constant 0 : i32
    %c0_i32_2 = arith.constant 0 : i32
    return %c0_i32, %c0_i32_0, %c0_i32_1 : i32, i32, i32
  }
  func.func @transform_7(%arg0: i32) -> (i32, i32) {
    %c0_i32 = arith.constant 0 : i32
    %c0_i32_0 = arith.constant 0 : i32
    %c0_i32_1 = arith.constant 0 : i32
    return %c0_i32, %c0_i32_0 : i32, i32
  }
}

</mosaic_0001>

<bundles_post_ra>
// kernel: crf_piecewise_nll.1
= control target key start
LH: loop header
LB: loop body
LE: loop exit
PB: predicated region body
PF: predicated region fallthrough
CT: control target
= control target key end

     0   :  { %vm66_vm0 = vcmask 261120   ;;  %v42_v15 = vlaneseq  ;;  %vm273_vm2 = vcmask 260096   ;;  %v483_v43 = vmov 0.0   ;;  %s484_s29 = smov 127   ;;  %s658_s4 = inlined_call_operand.vmem [shape: f32[32,32], index: 4, kind: input, shape index: {}]   ;;  %s659_s3 = inlined_call_operand.vmem [shape: f32[32,32], index: 3, kind: input, shape index: {}]   ;;  %s660_s0 = inlined_call_operand.vmem [shape: f32[2,8,32], index: 0, kind: input, shape index: {}]   ;;  %s661_s1 = inlined_call_operand.vmem [shape: s32[2,8], index: 1, kind: input, shape index: {}]   ;;  %s662_s5 = inlined_call_operand.vmem [shape: f32[2,7,32], index: 5, kind: input, shape index: {}]   ;;  %s663_s6 = inlined_call_operand.vmem [shape: f32[2,7,32], index: 6, kind: input, shape index: {}]   ;;  %s664_s2 = inlined_call_operand.vmem [shape: f32[2,8], index: 2, kind: input, shape index: {}]   ;;  %s665_s7 = inlined_call_operand.vmem [shape: f32[2,1], index: 7, kind: output, shape index: {}]  }
   0x1   :  { %v34_v0 = vld [vmem:[%s658_s4] sm:$0xff]  ;;  %v35_v1 = vld [vmem:[%s658_s4 + $0x8] sm:$0xff]  ;;  %vm533_vm1 = vmpackc.low %vm66_vm0, %vm66_vm0  ;;  %vm109_vm5 = vcmask 1041409   ;;  %vm296_vm6 = vcmask 57344   ;;  %vm311_vm7 = vcmask 49152   ;;  %vm338_vm8 = vcmask 0  }
   0x2   :  { %v423_v3 = vpack.c.bf16 %v35_v1, %v34_v0  ;;  %v36_v4 = vld [vmem:[%s658_s4 + $0x10] sm:$0xff]  ;;  %v37_v5 = vld [vmem:[%s658_s4 + $0x18] sm:$0xff]  ;;  %v30_v6 = vld [vmem:[%s659_s3] sm:$0xff]  ;;  %v586_v16 = vshrl.u32 %v42_v15, 7  ;;  %v612_v41 = vand.u32 127, %v42_v15 }
   0x3   :  { %v429_v7 = vpack.c.bf16 %v37_v5, %v36_v4  ;;  %417 = vmatprep.mubr.msk.f32.mxu0 %vm66_vm0, %v30_v6  ;;  %v32_v8 = vld [vmem:[%s659_s3 + $0x10] sm:$0xff]  ;;  %v31_v9 = vld [vmem:[%s659_s3 + $0x8] sm:$0xff]  ;;  %v33_v10 = vld [vmem:[%s659_s3 + $0x18] sm:$0xff] }
   0x4   :  { %425 = vmatprep.subr.msk.bf16.mxu0 %vm533_vm1, %v423_v3  ;;  %435 = vmatprep.subr.msk.bf16.mxu1 %vm533_vm1, %v423_v3  ;;  %v578_v11 = vld [vmem:[%s660_s0] sm:$0xff]  ;;  %v27_v12 = vld [vmem:[%s660_s0 + $0x8] sm:$0xff]  ;;  %v53_v17 = vsub.s32 1, %v586_v16  ;;  %v46_v15 = vsub.s32 0, %v586_v16 }
   0x5   :  { %428 = vmatpush3.bf16.xpose.msk.msra.mxu0 %vm533_vm1, %v423_v3  ;;  %437 = vmatpush3.bf16.xpose.msk.msra.mxu1 %vm533_vm1, %v423_v3  ;;  %v73_v13 = vsel %vm66_vm0, %v578_v11, -inf  ;;  %v76_v14 = vsel %vm66_vm0, %v27_v12, -inf  ;;  %v592_v18 = vld [vmem:[%s661_s1] sm:$0x3]  ;;  %v39_v47 = vld [vmem:[%s662_s5 + $0x8] sm:$0x7f] }
   0x6   :  { %431 = vmatprep.subr.msk.bf16.mxu0 %vm533_vm1, %v429_v7  ;;  %436 = vmatprep.subr.msk.bf16.mxu1 %vm533_vm1, %v429_v7  ;;  %v54_v19 = vrot.slane %v592_v18, %v53_v17  ;;  %v38_v34 = vld [vmem:[%s662_s5] sm:$0x7f]  ;;  %v41_v48 = vld [vmem:[%s663_s6 + $0x8] sm:$0x7f]  ;;  %v47_v17 = vrot.slane %v592_v18, %v46_v15 }
   0x7   :  { %420 = vmatprep.mubr.msk.f32.mxu1 %vm66_vm0, %v32_v8  ;;  %74 = vmax.xlane.f32.xlu1 %v73_v13  ;;  %v40_v35 = vld [vmem:[%s663_s6] sm:$0x7f]  ;;  %v272_v49 = vmul.f32 %v41_v48, %v39_v47 }
   0x8   :  { %v271_v36 = vmul.f32 %v40_v35, %v38_v34 }
   0x9   :  { %v277_v50 = vsel %vm273_vm2, %v272_v49, 0.0 }
   0xa   :  { %v274_v38 = vsel %vm273_vm2, %v271_v36, 0.0  ;;  %v284_v36 = vadd.s32 4294967295, %v612_v41 }
   0xb   :  { %77 = vmax.xlane.f32.xlu1 %v76_v14 }
   0xd   :  { %434 = vmatpush3.bf16.xpose.msk.msra.mxu0 %vm533_vm1, %v429_v7  ;;  %438 = vmatpush3.bf16.xpose.msk.msra.mxu1 %vm533_vm1, %v429_v7 }
  0x14   :  { %418 = vmatmul.mubr.msk.f32.vlgmr.msra.gmra.mrb[0].mxu0 %vm66_vm0, %v31_v9  ;;  %421 = vmatmul.mubr.msk.f32.vlgmr.msra.gmra.mrb[0].mxu1 %vm66_vm0, %v33_v10 }
  0x1c   :  { %56 = vbcast.lane.b32.xlu1 %v54_v19, 256 }
  0x40   :  { %275 = vadd.xlane.f32.xlu1 %v274_v38 }
  0x94   :  { %v599_v31 = vpop.xlane.xlu1 %74 }
  0x95   :  { %v79_v19 = vsub.f32 %v578_v11, %v599_v31 }
  0x98   :  { %v601_v32 = vpop.xlane.xlu1 %77 }
  0x99   :  { %v80_v33 = vsub.f32 %v27_v12, %v601_v32 }
  0x9b   :  { %v83_v37 = vmul.f32 1.442695, %v80_v33 }
  0x9c   :  { %v57_v42 = vpop.permute.xlu1 %56 }
  0x9d   :  { %461 = vpow2.f32 %v83_v37  ;;  %vm59_vm3 = vcmp.eq.s32.totalorder %v612_v41, %v57_v42 }
  0x9e   :  { %v392_v44 = vsel %vm59_vm3, 1.0, %v483_v43 }
  0x9f   :  { %v65_v45 = vmul.f32 %v392_v44, %v27_v12 }
  0xa1   :  { %v70_v46 = vsel %vm66_vm0, %v65_v45, 0.0  ;;  %v29_v45 = vld [vmem:[%s664_s2] sm:$0x3] }
  0xa7   :  { %v462_v39 = vpop.eup %461 }
  0xa8   :  { %v88_v40 = vsel %vm66_vm0, %v462_v39, 0.0 }
  0xa9   :  { %89 = vadd.xlane.f32.xlu1 %v88_v40  ;;  %v287_v40 = vsub.s32 %v284_v36, %v586_v16 }
  0xad   :  { %71 = vadd.xlane.f32.xlu1 %v70_v46 }
  0xcd   :  { %v276_v42 = vpop.xlane.xlu1 %275 }
  0xe7   :  { %v419_v20 = vpop.f32.mrb[0].mxu0  ;;  %v422_v21 = vpop.f32.mrb[0].mxu1 }
  0xe8   :  { %v223_v22 = vsel %vm66_vm0, %v419_v20, -inf  ;;  %v225_v23 = vsel %vm66_vm0, %v422_v21, -inf  ;;  %v203_v24 = vpop.f32.mrb[1].mxu0  ;;  %v213_v25 = vpop.f32.mrb[1].mxu1 }
  0xe9   :  { %v222_v26 = vsel %vm66_vm0, %v203_v24, -inf  ;;  %v224_v27 = vsel %vm66_vm0, %v213_v25, -inf }
  0xea   :  { %v226_v28 = vmax.f32 %v222_v26, %v223_v22  ;;  %v227_v29 = vmax.f32 %v224_v27, %v225_v23 }
  0xec   :  { %v228_v30 = vmax.f32 %v226_v28, %v227_v29 }
  0xee   :  { %229 = vmax.xlane.f32.xlu0 %v228_v30 }
 0x17b   :  { %v230_v51 = vpop.xlane.xlu0 %229 }
 0x17c   :  { %v231_v52 = vrot.slane %v230_v51, 4 }
 0x17e   :  { %v232_v53 = vmax.f32 %v230_v51, %v231_v52 }
 0x180   :  { %v233_v54 = vrot.slane %v232_v53, 2 }
 0x182   :  { %v234_v55 = vmax.f32 %v232_v53, %v233_v54 }
 0x184   :  { %v235_v56 = vrot.slane %v234_v55, 1 }
 0x186   :  { %v236_v57 = vmax.f32 %v234_v55, %v235_v56 }
 0x188   :  { %439 = vpush %v236_v57 }
 0x1b9   :  { %s440_s27 = spop %439 }
 0x1ba   :  { %v238_v58 = vstv %s440_s27 }
 0x1bb   :  { %v239_v59 = vsub.f32 %v203_v24, %v238_v58  ;;  %v240_v60 = vsub.f32 %v419_v20, %v238_v58  ;;  %v241_v61 = vsub.f32 %v213_v25, %v238_v58  ;;  %v242_v62 = vsub.f32 %v422_v21, %v238_v58 }
 0x1bc   :  { %v81_v20 = vmul.f32 1.442695, %v79_v19 }
 0x1bd   :  { %v243_v63 = vmul.f32 1.442695, %v239_v59  ;;  %v245_v0 = vmul.f32 1.442695, %v240_v60  ;;  %v247_v1 = vmul.f32 1.442695, %v241_v61 }
 0x1be   :  { %v249_v2 = vmul.f32 1.442695, %v242_v62 }
 0x1bf   :  { %463 = vpow2.f32 %v243_v63 }
 0x1c0   :  { %465 = vpow2.f32 %v245_v0 }
 0x1c1   :  { %467 = vpow2.f32 %v247_v1 }
 0x1c2   :  { %469 = vpow2.f32 %v249_v2 }
 0x1c3   :  { %471 = vpow2.f32 %v81_v20 }
 0x1c9   :  { %v464_v3 = vpop.eup %463 }
 0x1ca   :  { %v466_v4 = vpop.eup %465  ;;  %v251_v5 = vsel %vm66_vm0, %v464_v3, 0.0 }
 0x1cb   :  { %v468_v6 = vpop.eup %467  ;;  %v252_v7 = vsel %vm66_vm0, %v466_v4, 0.0 }
 0x1cc   :  { %v470_v8 = vpop.eup %469  ;;  %v253_v9 = vadd.f32 %v252_v7, %v251_v5  ;;  %v254_v10 = vsel %vm66_vm0, %v468_v6, 0.0  ;;  %v323_v5 = vsel %vm296_vm6, %v29_v45, 0.0  ;;  %v369_v6 = vrot.slane %v29_v45, 1 }
 0x1cd   :  { %v256_v13 = vsel %vm66_vm0, %v470_v8, 0.0  ;;  %v472_v21 = vpop.eup %471 }
 0x1ce   :  { %v255_v12 = vadd.f32 %v254_v10, %v253_v9  ;;  %v85_v22 = vsel %vm66_vm0, %v472_v21, 0.0 }
 0x1d0   :  { %v257_v14 = vadd.f32 %v256_v13, %v255_v12 }
 0x1d2   :  { %258 = vadd.xlane.f32.xlu0 %v257_v14 }
 0x1e8   :  { %49 = vbcast.lane.b32.xlu0 %v47_v17, 256 }
 0x207   :  { %278 = vadd.xlane.f32.xlu0 %v277_v50  ;;  %v90_v50 = vpop.xlane.xlu1 %89 }
 0x20b   :  { %86 = vadd.xlane.f32.xlu0 %v85_v22  ;;  %v72_v57 = vpop.xlane.xlu1 %71 }
 0x25f   :  { %v259_v23 = vpop.xlane.xlu0 %258 }
 0x260   :  { %v260_v24 = vrot.slane %v259_v23, 4 }
 0x262   :  { %v261_v25 = vadd.f32 %v260_v24, %v259_v23 }
 0x263   :  { %v50_v26 = vpop.permute.xlu0 %49 }
 0x264   :  { %v262_v27 = vrot.slane %v261_v25, 2  ;;  %vm58_vm4 = vcmp.eq.s32.totalorder %v612_v41, %v50_v26 }
 0x265   :  { %v391_v28 = vsel %vm58_vm4, 1.0, %v483_v43 }
 0x266   :  { %v64_v18 = vmul.f32 %v391_v28, %v578_v11  ;;  %v263_v29 = vadd.f32 %v262_v27, %v261_v25 }
 0x268   :  { %v67_v30 = vsel %vm66_vm0, %v64_v18, 0.0  ;;  %v264_v33 = vrot.slane %v263_v29, 1 }
 0x269   :  { %68 = vadd.xlane.f32.xlu0 %v67_v30 }
 0x26a   :  { %v265_v34 = vadd.f32 %v264_v33, %v263_v29 }
 0x26c   :  { %441 = vpush %v265_v34 }
 0x294   :  { %v279_v43 = vpop.xlane.xlu0 %278 }
 0x298   :  { %v87_v51 = vpop.xlane.xlu0 %86 }
 0x29d   :  { %s442_s5 = spop %441 }
 0x29e   :  { %v267_v35 = vstv %s442_s5 }
 0x29f   :  { %473 = vlog2.f32 %v267_v35 }
 0x2a0   :  { %475 = vlog2.f32 %v90_v50 }
 0x2a1   :  { %477 = vlog2.f32 %v87_v51 }
 0x2a9   :  { %v474_v37 = vpop.eup %473 }
 0x2aa   :  { %v269_v38 = vmul.f32 0.6931472, %v474_v37  ;;  %v476_v52 = vpop.eup %475 }
 0x2ab   :  { %v94_v53 = vmul.f32 0.6931472, %v476_v52  ;;  %v478_v54 = vpop.eup %477 }
 0x2ac   :  { %v270_v39 = vadd.f32 %v269_v38, %v238_v58  ;;  %v92_v56 = vmul.f32 0.6931472, %v478_v54  ;;  %v103_v58 = vsub.s32 %v612_v41, %v586_v16  ;;  %v371_v16 = vsel %vm296_vm6, %v369_v6, 0.0 }
 0x2ad   :  { %v96_v55 = vadd.f32 %v94_v53, %v601_v32 }
 0x2ae   :  { %v280_v11 = vsub.f32 %v276_v42, %v270_v39  ;;  %v281_v44 = vsub.f32 %v279_v43, %v270_v39  ;;  %v95_v60 = vadd.f32 %v92_v56, %v599_v31 }
 0x2af   :  { %v98_v59 = vsub.f32 %v72_v57, %v96_v55 }
 0x2b0   :  { %v288_v46 = vrot.slane %v280_v11, %v287_v40  ;;  %v292_v47 = vrot.slane %v281_v44, %v287_v40 }
 0x2b1   :  { %v108_v63 = vrot.slane %v98_v59, %v103_v58 }
 0x2b2   :  { %v293_v48 = vsel %vm109_vm5, %v292_v47, %v288_v46 }
 0x2b3   :  { %v295_v49 = vmul.f32 %v293_v48, %v29_v45 }
 0x2b5   :  { %308 = vrot.lane.b32.xlu0 %v295_v49, %s484_s29  ;;  %v353_v7 = vrot.slane %v295_v49, 1 }
 0x2f6   :  { %v69_v61 = vpop.xlane.xlu0 %68 }
 0x2f7   :  { %v97_v62 = vsub.f32 %v69_v61, %v95_v60 }
 0x2f9   :  { %v104_v0 = vrot.slane %v97_v62, %v103_v58 }
 0x2fb   :  { %v110_v1 = vsel %vm109_vm5, %v108_v63, %v104_v0 }
 0x2fc   :  { %v112_v2 = vmul.f32 %v110_v1, %v29_v45 }
 0x2fe   :  { %v297_v3 = vsel %vm296_vm6, %v112_v2, 0.0  ;;  %v341_v4 = vrot.slane %v112_v2, 1 }
 0x2ff   :  { %298 = vadd.xlane.f32.xlu1 %v297_v3 }
 0x300   :  { %v343_v32 = vsel %vm296_vm6, %v341_v4, 0.0 }
 0x301   :  { %344 = vadd.xlane.f32.xlu0 %v343_v32 }
 0x303   :  { %324 = vadd.xlane.f32.xlu1 %v323_v5 }
 0x305   :  { %372 = vadd.xlane.f32.xlu0 %v371_v16 }
 0x327   :  { %v309_v31 = vpop.permute.xlu0 %308 }
 0x328   :  { %v312_v41 = vsel %vm311_vm7, %v309_v31, 0.0 }
 0x329   :  { %313 = vadd.xlane.f32.xlu1 %v312_v41 }
 0x33a   :  { %354 = vrot.lane.b32.xlu1 %v353_v7, %s484_s29 }
 0x38c   :  { %v299_v8 = vpop.xlane.xlu1 %298 }
 0x38d   :  { %v300_v9 = vrot.slane %v299_v8, 4 }
 0x38e   :  { %v345_v35 = vpop.xlane.xlu0 %344 }
 0x38f   :  { %v301_v10 = vadd.f32 %v300_v9, %v299_v8  ;;  %v346_v36 = vrot.slane %v345_v35, 4 }
 0x390   :  { %v325_v17 = vpop.xlane.xlu1 %324 }
 0x391   :  { %v302_v12 = vrot.slane %v301_v10, 2  ;;  %v326_v19 = vrot.slane %v325_v17, 4  ;;  %v347_v37 = vadd.f32 %v346_v36, %v345_v35 }
 0x392   :  { %v373_v45 = vpop.xlane.xlu0 %372 }
 0x393   :  { %v303_v13 = vadd.f32 %v302_v12, %v301_v10  ;;  %v327_v20 = vadd.f32 %v326_v19, %v325_v17  ;;  %v348_v38 = vrot.slane %v347_v37, 2  ;;  %v374_v46 = vrot.slane %v373_v45, 4 }
 0x395   :  { %v304_v14 = vrot.slane %v303_v13, 1  ;;  %v328_v21 = vrot.slane %v327_v20, 2  ;;  %v349_v40 = vadd.f32 %v348_v38, %v347_v37  ;;  %v375_v47 = vadd.f32 %v374_v46, %v373_v45 }
 0x397   :  { %v305_v15 = vadd.f32 %v304_v14, %v303_v13  ;;  %v329_v26 = vadd.f32 %v328_v21, %v327_v20  ;;  %v350_v42 = vrot.slane %v349_v40, 1  ;;  %v376_v48 = vrot.slane %v375_v47, 2 }
 0x399   :  { %443 = vpush %v305_v15  ;;  %v330_v29 = vrot.slane %v329_v26, 1  ;;  %v351_v11 = vadd.f32 %v350_v42, %v349_v40  ;;  %v377_v52 = vadd.f32 %v376_v48, %v375_v47 }
 0x39b   :  { %v331_v34 = vadd.f32 %v330_v29, %v329_v26  ;;  %v378_v55 = vrot.slane %v377_v52, 1 }
 0x39d   :  { %v379_v58 = vadd.f32 %v378_v55, %v377_v52 }
 0x3b6   :  { %v314_v22 = vpop.xlane.xlu1 %313 }
 0x3b7   :  { %v315_v23 = vrot.slane %v314_v22, 4 }
 0x3b9   :  { %v316_v24 = vadd.f32 %v315_v23, %v314_v22 }
 0x3ba   :  { %v355_v25 = vpop.permute.xlu1 %354 }
 0x3bb   :  { %v317_v27 = vrot.slane %v316_v24, 2  ;;  %v357_v28 = vsel %vm311_vm7, %v355_v25, 0.0 }
 0x3bc   :  { %358 = vadd.xlane.f32.xlu1 %v357_v28 }
 0x3bd   :  { %v318_v18 = vadd.f32 %v317_v27, %v316_v24 }
 0x3bf   :  { %v319_v30 = vrot.slane %v318_v18, 1 }
 0x3c1   :  { %v320_v33 = vadd.f32 %v319_v30, %v318_v18 }
 0x3c3   :  { %445 = vpush %v320_v33 }
 0x3c4   :  { %447 = vpush %v331_v34 }
 0x3ca   :  { %s444_s2 = spop %443 }
 0x3f4   :  { %s446_s30 = spop %445 }
 0x3f5   :  { %s448_s8 = spop %447  ;;  %s322_s9 = sadd.f32 %s446_s30, %s444_s2 }
 0x3f6   :  { %v333_v39 = vstv %s448_s8 }
 0x3f7   :  { %479 = vrcp.f32 %v333_v39 }
 0x401   :  { %v480_v43 = vpop.eup %479 }
 0x402   :  { %449 = vpush %v480_v43 }
 0x403   :  { %451 = vpush %v351_v11 }
 0x433   :  { %s450_s10 = spop %449 }
 0x434   :  { %s336_s11 = smul.f32 %s450_s10, %s322_s9  ;;  %s452_s13 = spop %451 }
 0x436   :  { %v337_v44 = vstv %s336_s11 }
 0x437   :  { %339 = vst.msk [vmem:[%s665_s7] sm:$0x1] %vm338_vm8, %v337_v44 }
 0x449   :  { %v359_v49 = vpop.xlane.xlu1 %358 }
 0x44a   :  { %v360_v50 = vrot.slane %v359_v49, 4 }
 0x44c   :  { %v361_v51 = vadd.f32 %v360_v50, %v359_v49 }
 0x44e   :  { %v362_v53 = vrot.slane %v361_v51, 2 }
 0x450   :  { %v363_v54 = vadd.f32 %v362_v53, %v361_v51 }
 0x452   :  { %v364_v56 = vrot.slane %v363_v54, 1 }
 0x454   :  { %v365_v57 = vadd.f32 %v364_v56, %v363_v54 }
 0x456   :  { %453 = vpush %v365_v57 }
 0x457   :  { %455 = vpush %v379_v58 }
 0x487   :  { %s454_s14 = spop %453 }
 0x488   :  { %s456_s15 = spop %455  ;;  %s367_s16 = sadd.f32 %s454_s14, %s452_s13 }
 0x489   :  { %v381_v59 = vstv %s456_s15 }
 0x48a   :  { %481 = vrcp.f32 %v381_v59 }
 0x494   :  { %v482_v60 = vpop.eup %481 }
 0x495   :  { %457 = vpush %v482_v60 }
 0x4c6   :  { %s458_s17 = spop %457 }
 0x4c7   :  { %s384_s18 = smul.f32 %s458_s17, %s367_s16 }
 0x4c9   :  { %v385_v61 = vstv %s384_s18 }
 0x4ca   :  { %386 = vst.msk [vmem:[%s665_s7 + $0x1] sm:$0x1] %vm338_vm8, %v385_v61 }

</bundles_post_ra>
